<compile_context>
chip_gen: v7x
topology: tpu7x:2x2x1
jax: 0.10.0
libtpu: 0.0.40
codegen_flags: <defaults>
</compile_context>

<pallas_src>
import functools

import jax
import jax.numpy as jnp
from jax.experimental import pallas as pl
from jax.experimental.pallas import tpu as pltpu

N_ATOMS = 23
N_TYPES = 6
N_FEATURES = N_ATOMS * N_TYPES      # 138
N_HIDDEN = 50
N_HIDDEN2 = 20
CHARGES = [0.0, 1.0, 6.0, 7.0, 8.0, 16.0]


def _round_up(n, m):
    return ((n + m - 1) // m) * m


def baseline_kernel(x_ref, wbig_ref, bh_ref, wh2_ref, bh2_ref, wt_ref, bt_ref,
                    o_ref):
    # x: [tile_b, 138] — atom-sum / column-0 mask / charge scale are already
    # folded into W_big, so the tile goes straight into the MXU.
    x = x_ref[...]
    h1 = jnp.dot(x, wbig_ref[...], preferred_element_type=jnp.float32)
    h1 = jnp.maximum(h1 + bh_ref[...], 0.0)
    h2 = jnp.dot(h1, wh2_ref[...], preferred_element_type=jnp.float32)
    h2 = jnp.maximum(h2 + bh2_ref[...], 0.0)
    # Output width is 1: a lane-reduce avoids an N=1 MXU pass.
    out = jnp.sum(h2 * wt_ref[...], axis=-1, keepdims=True) + bt_ref[...]
    o_ref[...] = out.astype(o_ref.dtype)


def init_params(key):
    """PyTorch nn.Linear default init: U(-1/sqrt(fan_in), 1/sqrt(fan_in)).
       Weights stored PyTorch-style as [out, in]."""
    def linear(k, fan_in, fan_out):
        kw, kb = jax.random.split(k)
        bound = 1.0 / jnp.sqrt(jnp.float32(fan_in))
        w = jax.random.uniform(kw, (fan_out, fan_in), jnp.float32, -bound, bound)
        b = jax.random.uniform(kb, (fan_out,), jnp.float32, -bound, bound)
        return w, b

    k1, k2, k3 = jax.random.split(key, 3)
    wh, bh = linear(k1, N_TYPES, N_HIDDEN)
    wh2, bh2 = linear(k2, N_HIDDEN, N_HIDDEN2)
    wt, bt = linear(k3, N_HIDDEN2, 1)
    return wh, bh, wh2, bh2, wt, bt


def prepare_params(params, compute_dtype=jnp.float32):
    """One-time param prep (do NOT redo per call):
       fold sum-over-atoms, the x[:,0]=0 mask and the charge scaling into the
       first weight matrix, and lay every weight out row-major as [in, out].

       compute_dtype only affects the large x-side matmul operand; bfloat16 is
       exact for one-hot / count-valued inputs and halves x's HBM traffic."""
    wh, bh, wh2, bh2, wt, bt = params
    z = jnp.asarray(CHARGES, jnp.float32)
    z = z.at[0].set(0.0)                      # x[:, 0] = 0 (redundant: CHARGES[0]==0)
    scaled = z[:, None] * wh.T                # [n_types, n_hidden]
    wbig = jnp.tile(scaled, (N_ATOMS, 1))     # [138, n_hidden]
    return (
        wbig.astype(compute_dtype),
        bh.reshape(1, N_HIDDEN).astype(jnp.float32),
        wh2.T.astype(jnp.float32),            # [n_hidden, n_hidden2]
        bh2.reshape(1, N_HIDDEN2).astype(jnp.float32),
        wt.reshape(1, N_HIDDEN2).astype(jnp.float32),
        bt.reshape(1, 1).astype(jnp.float32),
    )


@functools.partial(jax.jit, static_argnames=("tile_b",))
def baseline_regressor(x, prepared, *, tile_b=512):
    """Forward pass. x: [batch, n_atoms, n_types]. Returns [batch, 1] float32."""
    wbig, bh, wh2, bh2, wt_row, bt = prepared
    B = x.shape[0]

    # Free view reshape of the row-major [B, 23, 6] layout -> lane-dense [B, 138].
    x_flat = x.reshape(B, N_FEATURES).astype(wbig.dtype)

    # Batch tiling: >=8 rows (sublane rule), capped at tile_b; pad B to a tile.
    tb = min(tile_b, _round_up(B, 8))
    b_pad = _round_up(B, tb)
    if b_pad != B:
        x_flat = jnp.pad(x_flat, ((0, b_pad - B), (0, 0)))
    grid = (b_pad // tb,)

    weight_args = (wbig, bh, wh2, bh2, wt_row, bt)
    weight_bytes = sum(a.size * a.dtype.itemsize for a in weight_args)
    cost = pl.CostEstimate(
        flops=2 * b_pad * (N_FEATURES * N_HIDDEN + N_HIDDEN * N_HIDDEN2 + N_HIDDEN2),
        transcendentals=0,
        bytes_accessed=b_pad * N_FEATURES * x_flat.dtype.itemsize
        + b_pad * 4
        + weight_bytes,
    )

    out = pl.pallas_call(
        baseline_kernel,
        out_shape=jax.ShapeDtypeStruct((b_pad, 1), jnp.float32),
        grid=grid,
        in_specs=[
            # x: one (tb, 138) lane-dense block per grid step (double-buffered).
            pl.BlockSpec((tb, N_FEATURES), lambda i: (i, 0)),
            # Weights / biases: full-array blocks with constant index maps, so
            # they stay resident in VMEM for the whole grid (no re-DMA).
            pl.BlockSpec(wbig.shape, lambda i: (0, 0)),
            pl.BlockSpec(bh.shape, lambda i: (0, 0)),
            pl.BlockSpec(wh2.shape, lambda i: (0, 0)),
            pl.BlockSpec(bh2.shape, lambda i: (0, 0)),
            pl.BlockSpec(wt_row.shape, lambda i: (0, 0)),
            pl.BlockSpec(bt.shape, lambda i: (0, 0)),
        ],
        out_specs=pl.BlockSpec((tb, 1), lambda i: (i, 0)),
        compiler_params=pltpu.CompilerParams(
            dimension_semantics=("parallel",),   # v7x: shard batch tiles over 2 TCs
            vmem_limit_bytes=32 * 1024 * 1024,   # footprint ~2 MiB; explicit headroom
        ),
        cost_estimate=cost,
    )(x_flat, *weight_args)

    return out[:B]


def baseline_regressor_ref(x, params):
    """Pure-JAX reference following the PyTorch forward order (f32-exact dots)."""
    wh, bh, wh2, bh2, wt, bt = params
    hi = jax.lax.Precision.HIGHEST
    z = jnp.asarray(CHARGES, jnp.float32).reshape(1, N_TYPES)
    s = jnp.sum(x.astype(jnp.float32), axis=1)
    s = s.at[:, 0].set(0.0)
    s = s * z
    h1 = jax.nn.relu(jnp.dot(s, wh.T, precision=hi) + bh)
    h2 = jax.nn.relu(jnp.dot(h1, wh2.T, precision=hi) + bh2)
    return jnp.dot(h2, wt.T, precision=hi) + bt


def baseline_regressor_folded_ref(x, prepared):
    """Pure-JAX check that the W_big folding is algebraically equivalent."""
    wbig, bh, wh2, bh2, wt_row, bt = prepared
    hi = jax.lax.Precision.HIGHEST
    xf = x.reshape(x.shape[0], N_FEATURES).astype(jnp.float32)
    h1 = jax.nn.relu(jnp.dot(xf, wbig.astype(jnp.float32), precision=hi) + bh)
    h2 = jax.nn.relu(jnp.dot(h1, wh2, precision=hi) + bh2)
    return jnp.sum(h2 * wt_row, axis=-1, keepdims=True) + bt


if __name__ == "__main__":
    key = jax.random.PRNGKey(0)
    kx, kp = jax.random.split(key)

    batch = 8
    # The module consumes one-hot atom-type encodings [batch, n_atoms, n_types];
    # build a deterministic random molecule batch.
    atom_types = jax.random.randint(kx, (batch, N_ATOMS), 0, N_TYPES)
    x = jax.nn.one_hot(atom_types, N_TYPES, dtype=jnp.float32)   # [8, 23, 6]

    params = init_params(kp)
    prepared = prepare_params(params)   # float32: exact PyTorch semantics.
    # For count/one-hot inputs, prepare_params(params, jnp.bfloat16) halves x's
    # HBM traffic with bit-identical results.

    out = jax.block_until_ready(baseline_regressor(x, prepared))
    assert out.shape == (batch, 1)

    ref = baseline_regressor_ref(x, params)
    folded_ref = baseline_regressor_folded_ref(x, prepared)

    # The weight folding is exact algebra: tight check, entirely in XLA @ f32.
    assert jnp.allclose(folded_ref, ref, atol=1e-3, rtol=1e-3), "fold mismatch"
    # The Pallas kernel's matmuls run at the MXU's default f32 contraction
    # precision (bf16 passes), which may differ from the f32-'highest' XLA
    # reference on different operand matrices; tolerance covers that rounding.
    assert jnp.allclose(out, ref, atol=5e-2, rtol=5e-2), "kernel mismatch vs reference"

    print("KERNEL_OK")
</pallas_src>

<mosaic_0001>
module attributes {stable_mosaic.version = 11 : i64} {
  func.func @baseline_kernel(%arg0: i32, %arg1: memref<8x138xf32, #tpu.memory_space<vmem>>, %arg2: memref<138x50xf32, #tpu.memory_space<vmem>>, %arg3: memref<1x50xf32, #tpu.memory_space<vmem>>, %arg4: memref<50x20xf32, #tpu.memory_space<vmem>>, %arg5: memref<1x20xf32, #tpu.memory_space<vmem>>, %arg6: memref<1x20xf32, #tpu.memory_space<vmem>>, %arg7: memref<1x1xf32, #tpu.memory_space<vmem>>, %arg8: memref<8x1xf32, #tpu.memory_space<vmem>>) attributes {dimension_semantics = [#tpu.dimension_semantics<parallel>], iteration_bounds = array<i64: 1>, scalar_prefetch = 0 : i64, scratch_operands = 0 : i64, tpu.core_type = #tpu.core_type<tc>, window_params = [{transform_indices = @transform_0, window_bounds = array<i64: 8, 138>}, {pipeline_mode = #tpu.pipeline_mode<synchronous>, transform_indices = @transform_1, window_bounds = array<i64: 138, 50>}, {pipeline_mode = #tpu.pipeline_mode<synchronous>, transform_indices = @transform_2, window_bounds = array<i64: 1, 50>}, {pipeline_mode = #tpu.pipeline_mode<synchronous>, transform_indices = @transform_3, window_bounds = array<i64: 50, 20>}, {pipeline_mode = #tpu.pipeline_mode<synchronous>, transform_indices = @transform_4, window_bounds = array<i64: 1, 20>}, {pipeline_mode = #tpu.pipeline_mode<synchronous>, transform_indices = @transform_5, window_bounds = array<i64: 1, 20>}, {pipeline_mode = #tpu.pipeline_mode<synchronous>, transform_indices = @transform_6, window_bounds = array<i64: 1, 1>}, {transform_indices = @transform_7, window_bounds = array<i64: 8, 1>}]} {
    %c0 = arith.constant 0 : index
    %c0_0 = arith.constant 0 : index
    %0 = vector.load %arg1[%c0, %c0_0] : memref<8x138xf32, #tpu.memory_space<vmem>>, vector<8x138xf32>
    %c0_1 = arith.constant 0 : index
    %c0_2 = arith.constant 0 : index
    %1 = vector.load %arg2[%c0_1, %c0_2] : memref<138x50xf32, #tpu.memory_space<vmem>>, vector<138x50xf32>
    %cst = arith.constant dense<0.000000e+00> : vector<8x50xf32>
    %2 = tpu.matmul %0, %1, %cst {dimension_numbers = #tpu.dot_dimension_numbers<[1], [0], [0], [1], [0, 0, 1, 1], [], []>} : vector<8x138xf32>, vector<138x50xf32>, vector<8x50xf32> -> vector<8x50xf32>
    %c0_3 = arith.constant 0 : index
    %c0_4 = arith.constant 0 : index
    %3 = vector.load %arg3[%c0_3, %c0_4] : memref<1x50xf32, #tpu.memory_space<vmem>>, vector<1x50xf32>
    %4 = vector.broadcast %3 : vector<1x50xf32> to vector<8x50xf32>
    %5 = arith.addf %2, %4 : vector<8x50xf32>
    %cst_5 = arith.constant 0.000000e+00 : f32
    %6 = vector.broadcast %cst_5 : f32 to vector<8x50xf32>
    %7 = arith.maximumf %5, %6 : vector<8x50xf32>
    %c0_6 = arith.constant 0 : index
    %c0_7 = arith.constant 0 : index
    %8 = vector.load %arg4[%c0_6, %c0_7] : memref<50x20xf32, #tpu.memory_space<vmem>>, vector<50x20xf32>
    %cst_8 = arith.constant dense<0.000000e+00> : vector<8x20xf32>
    %9 = tpu.matmul %7, %8, %cst_8 {dimension_numbers = #tpu.dot_dimension_numbers<[1], [0], [0], [1], [0, 0, 1, 1], [], []>} : vector<8x50xf32>, vector<50x20xf32>, vector<8x20xf32> -> vector<8x20xf32>
    %c0_9 = arith.constant 0 : index
    %c0_10 = arith.constant 0 : index
    %10 = vector.load %arg5[%c0_9, %c0_10] : memref<1x20xf32, #tpu.memory_space<vmem>>, vector<1x20xf32>
    %11 = vector.broadcast %10 : vector<1x20xf32> to vector<8x20xf32>
    %12 = arith.addf %9, %11 : vector<8x20xf32>
    %cst_11 = arith.constant 0.000000e+00 : f32
    %13 = vector.broadcast %cst_11 : f32 to vector<8x20xf32>
    %14 = arith.maximumf %12, %13 : vector<8x20xf32>
    %c0_12 = arith.constant 0 : index
    %c0_13 = arith.constant 0 : index
    %15 = vector.load %arg6[%c0_12, %c0_13] : memref<1x20xf32, #tpu.memory_space<vmem>>, vector<1x20xf32>
    %16 = vector.broadcast %15 : vector<1x20xf32> to vector<8x20xf32>
    %17 = arith.mulf %14, %16 : vector<8x20xf32>
    %cst_14 = arith.constant dense<0.000000e+00> : vector<8xf32>
    %18 = vector.multi_reduction <add>, %17, %cst_14 [1] : vector<8x20xf32> to vector<8xf32>
    %19 = vector.shape_cast %18 : vector<8xf32> to vector<8x1xf32>
    %c0_15 = arith.constant 0 : index
    %c0_16 = arith.constant 0 : index
    %20 = vector.load %arg7[%c0_15, %c0_16] : memref<1x1xf32, #tpu.memory_space<vmem>>, vector<1x1xf32>
    %21 = vector.broadcast %20 : vector<1x1xf32> to vector<8x1xf32>
    %22 = arith.addf %19, %21 : vector<8x1xf32>
    %c0_17 = arith.constant 0 : index
    %c0_18 = arith.constant 0 : index
    %23 = vector.load %arg8[%c0_17, %c0_18] : memref<8x1xf32, #tpu.memory_space<vmem>>, vector<8x1xf32>
    tpu.vector_store %arg8[%c0_17, %c0_18], %22 {strides = array<i32>} : memref<8x1xf32, #tpu.memory_space<vmem>>, vector<8x1xf32>,
    return
  }
  func.func @transform_0(%arg0: i32) -> (i32, i32) {
    %c0_i32 = arith.constant 0 : i32
    %c0_i32_0 = arith.constant 0 : i32
    return %arg0, %c0_i32 : i32, i32
  }
  func.func @transform_1(%arg0: i32) -> (i32, i32) {
    %c0_i32 = arith.constant 0 : i32
    %c0_i32_0 = arith.constant 0 : i32
    %c0_i32_1 = arith.constant 0 : i32
    return %c0_i32, %c0_i32_0 : i32, i32
  }
  func.func @transform_2(%arg0: i32) -> (i32, i32) {
    %c0_i32 = arith.constant 0 : i32
    %c0_i32_0 = arith.constant 0 : i32
    %c0_i32_1 = arith.constant 0 : i32
    return %c0_i32, %c0_i32_0 : i32, i32
  }
  func.func @transform_3(%arg0: i32) -> (i32, i32) {
    %c0_i32 = arith.constant 0 : i32
    %c0_i32_0 = arith.constant 0 : i32
    %c0_i32_1 = arith.constant 0 : i32
    return %c0_i32, %c0_i32_0 : i32, i32
  }
  func.func @transform_4(%arg0: i32) -> (i32, i32) {
    %c0_i32 = arith.constant 0 : i32
    %c0_i32_0 = arith.constant 0 : i32
    %c0_i32_1 = arith.constant 0 : i32
    return %c0_i32, %c0_i32_0 : i32, i32
  }
  func.func @transform_5(%arg0: i32) -> (i32, i32) {
    %c0_i32 = arith.constant 0 : i32
    %c0_i32_0 = arith.constant 0 : i32
    %c0_i32_1 = arith.constant 0 : i32
    return %c0_i32, %c0_i32_0 : i32, i32
  }
  func.func @transform_6(%arg0: i32) -> (i32, i32) {
    %c0_i32 = arith.constant 0 : i32
    %c0_i32_0 = arith.constant 0 : i32
    %c0_i32_1 = arith.constant 0 : i32
    return %c0_i32, %c0_i32_0 : i32, i32
  }
  func.func @transform_7(%arg0: i32) -> (i32, i32) {
    %c0_i32 = arith.constant 0 : i32
    %c0_i32_0 = arith.constant 0 : i32
    return %arg0, %c0_i32 : i32, i32
  }
}

</mosaic_0001>

<bundles_post_ra>
// kernel: baseline_regressor.1
= control target key start
LH: loop header
LB: loop body
LE: loop exit
PB: predicated region body
PF: predicated region fallthrough
CT: control target
= control target key end

     0   :  { %v326_v0 = vmov 0.0|0.0   ;;  %vm55_vm0 = vcmask 80896   ;;  %vm59_vm1 = vcmask 1041408   ;;  %vm327_vm2 = vmmov 1   ;;  %s468_s1 = inlined_call_operand.vmem [shape: f32[138,50], index: 1, kind: input, shape index: {}]   ;;  %s469_s0 = inlined_call_operand.vmem [shape: f32[8,138], index: 0, kind: input, shape index: {}]   ;;  %s470_s3 = inlined_call_operand.vmem [shape: f32[50,20], index: 3, kind: input, shape index: {}]   ;;  %s471_s2 = inlined_call_operand.vmem [shape: f32[1,50], index: 2, kind: input, shape index: {}]   ;;  %s472_s6 = inlined_call_operand.<no memory space> [shape: f32[1,1], index: 6, kind: input, shape index: {}]   ;;  %s473_s4 = inlined_call_operand.vmem [shape: f32[1,20], index: 4, kind: input, shape index: {}]   ;;  %s474_s5 = inlined_call_operand.vmem [shape: f32[1,20], index: 5, kind: input, shape index: {}]   ;;  %s475_s7 = inlined_call_operand.vmem [shape: f32[8,1], index: 7, kind: output, shape index: {}]  }
   0x1   :  { %285 = vmatprep.subr.bf16.mxu0 %v326_v0  ;;  %v30_v1 = vld [vmem:[%s468_s1] sm:$0xff]  ;;  %v31_v2 = vld [vmem:[%s468_s1 + $0x8] sm:$0xff]  ;;  %v32_v3 = vld [vmem:[%s468_s1 + $0x10] sm:$0xff]  ;;  %313 = vmatprep.subr.bf16.mxu1 %v326_v0  ;;  %v328_v39 = vmov 0.0   ;;  %vm329_vm4 = vmmov 0   ;;  %vm148_vm5 = vcmask 408576   ;;  %v12_v46 = vstv %s472_s6 }
   0x2   :  { %v286_v4 = vpack.c.bf16 %v31_v2, %v30_v1  ;;  %v33_v5 = vld [vmem:[%s468_s1 + $0x18] sm:$0xff]  ;;  %v34_v7 = vld [vmem:[%s468_s1 + $0x20] sm:$0xff]  ;;  %v35_v8 = vld [vmem:[%s468_s1 + $0x28] sm:$0xff]  ;;  %282 = vmatprep.mubr.msk.f32.mxu1 %vm329_vm4, %v328_v39  ;;  %13 = vst [vmem:[#allocation2] sm:$0x1] %v12_v46  ;;  %vm234_vm6 = vcmask 162816  }
   0x3   :  { %v289_v6 = vpack.c.bf16 %v33_v5, %v32_v3  ;;  %v29_v9 = vld [vmem:[%s469_s0 + $0x8] sm:$0xff]  ;;  %v292_v10 = vpack.c.bf16 %v35_v8, %v34_v7  ;;  %v134_v11 = vld [vmem:[%s470_s3] sm:$0xff]  ;;  %v136_v13 = vld [vmem:[%s470_s3 + $0x10] sm:$0xff]  ;;  %vm246_vm7 = vcmask 7168  }
   0x4   :  { %287 = vmatpush1.bf16.msra.mxu0 %v286_v4  ;;  %254 = vmatprep.mubr.msk.f32.mxu0 %vm55_vm0, %v29_v9  ;;  %v135_v12 = vld [vmem:[%s470_s3 + $0x8] sm:$0xff]  ;;  %v36_v14 = vld [vmem:[%s468_s1 + $0x30] sm:$0xff]  ;;  %v37_v15 = vld [vmem:[%s468_s1 + $0x38] sm:$0xff] }
   0x5   :  { %288 = vmatprep.subr.bf16.mxu0 %v326_v0  ;;  %v314_v16 = vpack.c.bf16 %v135_v12, %v134_v11  ;;  %v137_v17 = vld [vmem:[%s470_s3 + $0x18] sm:$0xff]  ;;  %v295_v19 = vpack.c.bf16 %v37_v15, %v36_v14  ;;  %v38_v20 = vld [vmem:[%s468_s1 + $0x40] sm:$0xff]  ;;  %v39_v21 = vld [vmem:[%s468_s1 + $0x48] sm:$0xff] }
   0x6   :  { %v317_v18 = vpack.c.bf16 %v137_v17, %v136_v13  ;;  %v298_v22 = vpack.c.bf16 %v39_v21, %v38_v20  ;;  %v40_v23 = vld [vmem:[%s468_s1 + $0x50] sm:$0xff]  ;;  %v41_v24 = vld [vmem:[%s468_s1 + $0x58] sm:$0xff]  ;;  %v42_v26 = vld [vmem:[%s468_s1 + $0x60] sm:$0xff] }
   0x7   :  { %315 = vmatpush3.bf16.msra.mxu1 %v314_v16  ;;  %v301_v25 = vpack.c.bf16 %v41_v24, %v40_v23  ;;  %v43_v27 = vld [vmem:[%s468_s1 + $0x68] sm:$0xff]  ;;  %v44_v29 = vld [vmem:[%s468_s1 + $0x70] sm:$0xff]  ;;  %v45_v30 = vld [vmem:[%s468_s1 + $0x78] sm:$0xff] }
   0x8   :  { %290 = vmatpush1.bf16.msra.mxu0 %v289_v6  ;;  %316 = vmatprep.subr.bf16.mxu1 %v326_v0  ;;  %v304_v28 = vpack.c.bf16 %v43_v27, %v42_v26  ;;  %v307_v31 = vpack.c.bf16 %v45_v30, %v44_v29  ;;  %v46_v32 = vld [vmem:[%s468_s1 + $0x80] sm:$0xff]  ;;  %v47_v33 = vld [vmem:[%s468_s1 + $0x88] sm:$0x3]  ;;  %vm311_vm3 = vmpackc.low %vm59_vm1, %vm327_vm2 }
   0x9   :  { %291 = vmatprep.subr.bf16.mxu0 %v326_v0  ;;  %v310_v34 = vpack.c.bf16 %v47_v33, %v46_v32  ;;  %v28_v35 = vld [vmem:[%s469_s0] sm:$0xff]  ;;  %v139_v37 = vld [vmem:[%s470_s3 + $0x28] sm:$0xff]  ;;  %v140_v40 = vld [vmem:[%s470_s3 + $0x30] sm:$0x3] }
   0xa   :  { %v138_v36 = vld [vmem:[%s470_s3 + $0x20] sm:$0xff] }
   0xb   :  { %318 = vmatpush3.bf16.msra.mxu1 %v317_v18  ;;  %v320_v38 = vpack.c.bf16 %v139_v37, %v138_v36  ;;  %v252_v41 = vld [vmem:[%s471_s2] ss:$0 sm:$0xff] }
   0xc   :  { %293 = vmatpush1.bf16.msra.mxu0 %v292_v10  ;;  %319 = vmatprep.subr.bf16.mxu1 %v326_v0  ;;  %v255_v47 = vld [vmem:[%s473_s4] ss:$0 sm:$0xff] }
   0xd   :  { %294 = vmatprep.subr.bf16.mxu0 %v326_v0  ;;  %v258_v51 = vld [vmem:[%s474_s5] ss:$0 sm:$0xff] }
   0xe   :  { %v259_v55 = vld [vmem:[#allocation2] ss:$0 sm:$0xff] }
   0xf   :  { %321 = vmatpush3.bf16.msra.mxu1 %v320_v38 }
  0x10   :  { %296 = vmatpush1.bf16.msra.mxu0 %v295_v19  ;;  %280 = vmatprep.subr.mxu1 %v328_v39 }
  0x11   :  { %297 = vmatprep.subr.bf16.mxu0 %v326_v0 }
  0x13   :  { %281 = vmatpush3.msk.msra.mxu1 %vm59_vm1, %v140_v40 }
  0x14   :  { %299 = vmatpush1.bf16.msra.mxu0 %v298_v22 }
  0x15   :  { %300 = vmatprep.subr.bf16.mxu0 %v326_v0 }
  0x18   :  { %302 = vmatpush1.bf16.msra.mxu0 %v301_v25 }
  0x19   :  { %303 = vmatprep.subr.bf16.mxu0 %v326_v0 }
  0x1c   :  { %305 = vmatpush1.bf16.msra.mxu0 %v304_v28 }
  0x1d   :  { %306 = vmatprep.subr.bf16.mxu0 %v326_v0 }
  0x20   :  { %308 = vmatpush1.bf16.msra.mxu0 %v307_v31 }
  0x21   :  { %309 = vmatprep.subr.bf16.mxu0 %v326_v0 }
  0x24   :  { %312 = vmatpush1.bf16.msk.msra.mxu0 %vm311_vm3, %v310_v34 }
  0x27   :  { %128 = vmatmul.mubr.f32.vlgmr.msra.gmra.mrb[0].mxu0 %v28_v35 }
  0xfa   :  { %v129_v42 = vpop.f32.mrb[0].mxu0 }
  0xfb   :  { %v130_v43 = vadd.f32 %v252_v41, %v129_v42  ;;  %v131_v44 = vpop.f32.mrb[1].mxu0 }
  0xfd   :  { %v133_v45 = vmax.f32 %v130_v43, 0.0 }
  0xff   :  { %283 = vmatmul.mubr.msk.f32.vlgmr.msra.gmra.mrb[0].mxu1 %vm148_vm5, %v133_v45 }
 0x1d2   :  { %v221_v48 = vpop.f32.mrb[0].mxu1 }
 0x1d3   :  { %v222_v49 = vadd.f32 %v255_v47, %v221_v48  ;;  %v284_v50 = vpop.f32.mrb[1].mxu1 }
 0x1d5   :  { %v225_v52 = vmax.f32 %v222_v49, 0.0 }
 0x1d7   :  { %v233_v53 = vmul.f32 %v258_v51, %v225_v52 }
 0x1d9   :  { %v235_v54 = vsel %vm234_vm6, %v233_v53, 0.0 }
 0x1da   :  { %236 = vadd.xlane.f32.xlu0 %v235_v54 }
 0x267   :  { %v237_v56 = vpop.xlane.xlu0 %236 }
 0x268   :  { %v245_v57 = vadd.f32 %v259_v55, %v237_v56 }
 0x26a   :  { %247 = vst.msk [vmem:[%s475_s7] sm:$0xff] %vm246_vm7, %v245_v57 }

</bundles_post_ra>
